<compile_context>
chip_gen: v6e
topology: v6e:2x2x1
jax: 0.10.0
libtpu: 0.0.40
codegen_flags: <defaults>
</compile_context>

<pallas_src>
import functools

import jax
import jax.numpy as jnp
from jax.experimental import pallas as pl
from jax.experimental.pallas import tpu as pltpu


# --------------------------------------------------------------------------- #
# Kernel
# --------------------------------------------------------------------------- #
def _stem_kernel(x_ref, w1_ref, w2_ref, b1_ref, b2_ref, o_ref,
                 xp1_ref, xp2_ref, *, B, H, W, Cin, Cout):
    """Fused (conv3x3(+folded BN scale) -> bias -> LeakyReLU) x 2 for B images.

    Layout: activations are lane-dense, a[h, w*C + c].

    x_ref   : (B, H, W*Cin)   bf16   input images (lane-dense NHWC)
    w1_ref  : (3, W*Cin,  W*Cout) bf16  banded conv1 weights (BN scale folded)
    w2_ref  : (3, W*Cout, W*Cout) bf16  banded conv2 weights (BN scale folded)
    b*_ref  : (1, W*Cout)  f32    folded BN bias, tiled over w
    o_ref   : (B, H, W*Cout) f32  output (lane-dense)
    xp1_ref : (B*(H+2), W*Cin)  f32 VMEM  height-padded, batch-stacked conv1 in
    xp2_ref : (B*(H+2), W*Cout) f32 VMEM  height-padded, batch-stacked conv2 in
    """
    Hp = H + 2
    M = B * Hp - 2          # matmul rows: all valid rows + 2 junk rows per
                            # internal image boundary (unused, just skipped)

    def band_conv(xp_ref, w_ref, b_ref):
        # 3 MXU pushes (one per kernel row dy); the dx taps and the width
        # padding are folded into the banded weights.  bf16 in, f32 acc.
        acc = jnp.zeros((M, W * Cout), jnp.float32)
        for dy in range(3):
            acc = acc + jnp.dot(xp_ref[dy:dy + M, :].astype(jnp.bfloat16),
                                w_ref[dy],
                                preferred_element_type=jnp.float32)
        y = acc + b_ref[...]              # folded-BN bias (scale already in w)
        return jnp.maximum(y, 0.1 * y)    # LeakyReLU(0.1): single vmax

    # ---------------- layer 1 ----------------
    # Zero only the 2 halo rows per image, then write the interior once.
    zero1 = jnp.zeros((1, W * Cin), jnp.float32)
    for n in range(B):
        xp1_ref[n * Hp:n * Hp + 1, :] = zero1
        xp1_ref[(n + 1) * Hp - 1:(n + 1) * Hp, :] = zero1
        xp1_ref[n * Hp + 1:n * Hp + 1 + H, :] = x_ref[n].astype(jnp.float32)
    y1 = band_conv(xp1_ref, w1_ref, b1_ref)          # (M, W*Cout) f32

    # ---------------- layer 2 (intermediate never leaves VMEM) -------------
    zero2 = jnp.zeros((1, W * Cout), jnp.float32)
    for n in range(B):
        xp2_ref[n * Hp:n * Hp + 1, :] = zero2
        xp2_ref[(n + 1) * Hp - 1:(n + 1) * Hp, :] = zero2
        xp2_ref[n * Hp + 1:n * Hp + 1 + H, :] = y1[n * Hp:n * Hp + H, :]
    y2 = band_conv(xp2_ref, w2_ref, b2_ref)

    for n in range(B):
        o_ref[n] = y2[n * Hp:n * Hp + H, :].astype(o_ref.dtype)


# --------------------------------------------------------------------------- #
# Host-side preparation (runs once, outside the jitted forward)
# --------------------------------------------------------------------------- #
def _banded_conv_weights(w_hwio, scale, width):
    """(3,3,C,Cout) HWIO weights (BN scale folded) -> (3, width*C, width*Cout) bf16.

    bands[dy][(w+dx-1)*C + c, w*Cout + co] = w[dy,dx,c,co] * scale[co]
    Taps outside [0, width) are dropped -> 'same' padding along width.
    """
    w = w_hwio.astype(jnp.float32) * scale.astype(jnp.float32)[None, None, None, :]
    kh, kw, C, Cout = w.shape
    bands = []
    for dy in range(kh):
        band = jnp.zeros((width * C, width * Cout), jnp.float32)
        for dx in range(kw):
            shift = jnp.eye(width, width, k=1 - dx, dtype=jnp.float32)
            band = band + jnp.kron(shift, w[dy, dx])
        bands.append(band)
    return jnp.stack(bands, axis=0).astype(jnp.bfloat16)


def prepare_stem_inputs(params, width):
    """Build banded bf16 weights (scale folded) and tiled f32 biases once."""
    def tile_bias(b):
        c = b.shape[0]
        return jnp.tile(b.astype(jnp.float32), width).reshape(1, width * c)

    return dict(
        w1b=_banded_conv_weights(params["w1"], params["s1"], width),
        w2b=_banded_conv_weights(params["w2"], params["s2"], width),
        b1=tile_bias(params["b1"]),
        b2=tile_bias(params["b2"]),
    )


def _images_per_block(n_images):
    """Single-TC v5e/v6e: merge the whole batch into one big-M grid step.
    Dual-TC v7x: keep >=2 parallel grid blocks so both TensorCores get work."""
    try:
        kind = jax.devices()[0].device_kind.lower()
    except Exception:
        kind = ""
    dual_tc = ("v7" in kind) or ("7x" in kind)
    b = max(1, n_images // 2) if dual_tc else n_images
    while n_images % b:
        b -= 1
    return b


# --------------------------------------------------------------------------- #
# Forward
# --------------------------------------------------------------------------- #
@jax.jit
def stem_forward(prep, x_nchw):
    """Stem.forward: (conv3x3 -> BN -> LeakyReLU) x 2. Input NCHW, output NCHW."""
    N, Cin, H, W = x_nchw.shape
    Cout = prep["w1b"].shape[2] // W
    assert prep["w1b"].shape[1] == W * Cin

    # NCHW -> lane-dense (N, H, W*Cin) bf16; pure layout change + narrow DMA.
    x_ld = jnp.transpose(x_nchw, (0, 2, 3, 1)).reshape(N, H, W * Cin)
    x_ld = x_ld.astype(jnp.bfloat16)

    B = _images_per_block(N)
    G = N // B
    Hp = H + 2

    kernel = functools.partial(_stem_kernel, B=B, H=H, W=W, Cin=Cin, Cout=Cout)
    resident = pl.BlockSpec(memory_space=pltpu.MemorySpace.VMEM)  # no per-step DMA

    out_ld = pl.pallas_call(
        kernel,
        out_shape=jax.ShapeDtypeStruct((N, H, W * Cout), jnp.float32),
        grid=(G,),
        in_specs=[
            pl.BlockSpec((B, H, W * Cin), lambda g: (g, 0, 0)),
            resident,   # w1b
            resident,   # w2b
            resident,   # b1
            resident,   # b2
        ],
        out_specs=pl.BlockSpec((B, H, W * Cout), lambda g: (g, 0, 0)),
        scratch_shapes=[
            pltpu.VMEM((B * Hp, W * Cin), jnp.float32),
            pltpu.VMEM((B * Hp, W * Cout), jnp.float32),
        ],
        compiler_params=pltpu.CompilerParams(
            dimension_semantics=("parallel",),
            vmem_limit_bytes=32 * 1024 * 1024),
    )(x_ld, prep["w1b"], prep["w2b"], prep["b1"], prep["b2"])

    out = out_ld.reshape(N, H, W, Cout)               # lane-dense -> NHWC (free)
    return jnp.transpose(out, (0, 3, 1, 2))           # NHWC -> NCHW


# --------------------------------------------------------------------------- #
# Params + references
# --------------------------------------------------------------------------- #
def init_stem_params(key, stem_width=16, in_channels=3):
    """Deterministic params mirroring Stem.__init__ (conv no-bias, eval-mode BN fold)."""
    k1, k2, k3, k4 = jax.random.split(key, 4)
    eps = 1e-5

    def conv_w(k, cin, cout):
        std = (2.0 / (cin * 3 * 3)) ** 0.5           # kaiming-normal, fan_in
        return std * jax.random.normal(k, (3, 3, cin, cout), dtype=jnp.float32)

    def bn_fold(k, c):
        kg, kb, km, kv = jax.random.split(k, 4)
        gamma = 1.0 + 0.1 * jax.random.normal(kg, (c,), jnp.float32)
        beta = 0.1 * jax.random.normal(kb, (c,), jnp.float32)
        mean = 0.1 * jax.random.normal(km, (c,), jnp.float32)
        var = jnp.abs(1.0 + 0.1 * jax.random.normal(kv, (c,), jnp.float32))
        scale = gamma / jnp.sqrt(var + eps)
        bias = beta - mean * scale
        return scale, bias

    w1 = conv_w(k1, in_channels, stem_width)
    w2 = conv_w(k2, stem_width, stem_width)
    s1, b1 = bn_fold(k3, stem_width)
    s2, b2 = bn_fold(k4, stem_width)
    return dict(w1=w1, s1=s1, b1=b1, w2=w2, s2=s2, b2=b2)


def _reference_forward_f32(params, x_nchw):
    """Exact module semantics in f32 (XLA conv): loose sanity bound vs bf16 kernel."""
    def layer(x, w, s, b):
        y = jax.lax.conv_general_dilated(
            x, w.astype(jnp.float32), (1, 1), "SAME",
            dimension_numbers=("NHWC", "HWIO", "NHWC"))
        y = y * s + b
        return jnp.where(y > 0, y, 0.1 * y)

    x = jnp.transpose(x_nchw, (0, 2, 3, 1)).astype(jnp.float32)
    y = layer(x, params["w1"], params["s1"], params["b1"])
    y = layer(y, params["w2"], params["s2"], params["b2"])
    return jnp.transpose(y, (0, 3, 1, 2))


def _reference_forward_bf16(params, x_nchw):
    """Same rounding points as the kernel: scale folded into weights, bf16 conv
    operands, f32 accumulation, f32 epilogue."""
    def layer(x, w, s, b):
        w = (w.astype(jnp.float32) * s[None, None, None, :]).astype(jnp.bfloat16)
        y = jax.lax.conv_general_dilated(
            x.astype(jnp.bfloat16), w, (1, 1), "SAME",
            dimension_numbers=("NHWC", "HWIO", "NHWC"),
            preferred_element_type=jnp.float32)
        y = y + b
        return jnp.maximum(y, 0.1 * y)

    x = jnp.transpose(x_nchw, (0, 2, 3, 1)).astype(jnp.float32)
    y = layer(x, params["w1"], params["s1"], params["b1"])
    y = layer(y, params["w2"], params["s2"], params["b2"])
    return jnp.transpose(y, (0, 3, 1, 2))


if __name__ == "__main__":
    key = jax.random.PRNGKey(0)
    kp, kx = jax.random.split(key)
    params = init_stem_params(kp, stem_width=16, in_channels=3)

    # Small deterministic input consistent with the module: N=2, C=3 (RGB), 16x16.
    x = jax.random.normal(kx, (2, 3, 16, 16), dtype=jnp.float32)

    prep = prepare_stem_inputs(params, width=16)       # hoisted, runs once
    out = jax.block_until_ready(stem_forward(prep, x))
    assert out.shape == (2, 16, 16, 16), out.shape

    # Strong check: reference with identical bf16 rounding points.
    ref_bf16 = _reference_forward_bf16(params, x)
    err_bf16 = float(jnp.max(jnp.abs(out - ref_bf16)))
    assert jnp.allclose(out, ref_bf16, atol=1e-2, rtol=1e-2), err_bf16

    # Loose check: exact f32 module semantics (bounds the bf16 quantization cost).
    ref_f32 = _reference_forward_f32(params, x)
    err_f32 = float(jnp.max(jnp.abs(out - ref_f32)))
    assert jnp.allclose(out, ref_f32, atol=2e-1, rtol=1e-1), err_f32

    print("KERNEL_OK")
</pallas_src>

<mosaic_0001>
module attributes {stable_mosaic.version = 11 : i64} {
  func.func @_stem_kernel(%arg0: i32, %arg1: memref<2x16x48xbf16, #tpu.memory_space<vmem>>, %arg2: memref<3x48x256xbf16, #tpu.memory_space<vmem>>, %arg3: memref<3x256x256xbf16, #tpu.memory_space<vmem>>, %arg4: memref<1x256xf32, #tpu.memory_space<vmem>>, %arg5: memref<1x256xf32, #tpu.memory_space<vmem>>, %arg6: memref<2x16x256xf32, #tpu.memory_space<vmem>>, %arg7: memref<36x48xf32, #tpu.memory_space<vmem>>, %arg8: memref<36x256xf32, #tpu.memory_space<vmem>>) attributes {dimension_semantics = [#tpu.dimension_semantics<parallel>], iteration_bounds = array<i64: 1>, scalar_prefetch = 0 : i64, scratch_operands = 2 : i64, tpu.core_type = #tpu.core_type<tc>, window_params = [{transform_indices = @transform_0, window_bounds = array<i64: 2, 16, 48>}, {pipeline_mode = #tpu.pipeline_mode<synchronous>, transform_indices = @transform_1, window_bounds = array<i64: 3, 48, 256>}, {pipeline_mode = #tpu.pipeline_mode<synchronous>, transform_indices = @transform_2, window_bounds = array<i64: 3, 256, 256>}, {pipeline_mode = #tpu.pipeline_mode<synchronous>, transform_indices = @transform_3, window_bounds = array<i64: 1, 256>}, {pipeline_mode = #tpu.pipeline_mode<synchronous>, transform_indices = @transform_4, window_bounds = array<i64: 1, 256>}, {transform_indices = @transform_5, window_bounds = array<i64: 2, 16, 256>}]} {
    %cst = arith.constant 0.000000e+00 : f32
    %0 = vector.broadcast %cst : f32 to vector<1x48xf32>
    %c0 = arith.constant 0 : index
    %c0_0 = arith.constant 0 : index
    %1 = vector.load %arg7[%c0, %c0_0] : memref<36x48xf32, #tpu.memory_space<vmem>>, vector<1x48xf32>
    tpu.vector_store %arg7[%c0, %c0_0], %0 {strides = array<i32>} : memref<36x48xf32, #tpu.memory_space<vmem>>, vector<1x48xf32>,
    %c17 = arith.constant 17 : index
    %c0_1 = arith.constant 0 : index
    %2 = vector.load %arg7[%c17, %c0_1] : memref<36x48xf32, #tpu.memory_space<vmem>>, vector<1x48xf32>
    tpu.vector_store %arg7[%c17, %c0_1], %0 {strides = array<i32>} : memref<36x48xf32, #tpu.memory_space<vmem>>, vector<1x48xf32>,
    %c0_2 = arith.constant 0 : index
    %c0_3 = arith.constant 0 : index
    %c0_4 = arith.constant 0 : index
    %3 = vector.load %arg1[%c0_2, %c0_3, %c0_4] : memref<2x16x48xbf16, #tpu.memory_space<vmem>>, vector<1x16x48xbf16>
    %4 = vector.shape_cast %3 : vector<1x16x48xbf16> to vector<16x48xbf16>
    %5 = arith.extf %4 : vector<16x48xbf16> to vector<16x48xf32>
    %c1 = arith.constant 1 : index
    %c0_5 = arith.constant 0 : index
    %6 = vector.load %arg7[%c1, %c0_5] : memref<36x48xf32, #tpu.memory_space<vmem>>, vector<16x48xf32>
    tpu.vector_store %arg7[%c1, %c0_5], %5 {strides = array<i32>} : memref<36x48xf32, #tpu.memory_space<vmem>>, vector<16x48xf32>,
    %c18 = arith.constant 18 : index
    %c0_6 = arith.constant 0 : index
    %7 = vector.load %arg7[%c18, %c0_6] : memref<36x48xf32, #tpu.memory_space<vmem>>, vector<1x48xf32>
    tpu.vector_store %arg7[%c18, %c0_6], %0 {strides = array<i32>} : memref<36x48xf32, #tpu.memory_space<vmem>>, vector<1x48xf32>,
    %c35 = arith.constant 35 : index
    %c0_7 = arith.constant 0 : index
    %8 = vector.load %arg7[%c35, %c0_7] : memref<36x48xf32, #tpu.memory_space<vmem>>, vector<1x48xf32>
    tpu.vector_store %arg7[%c35, %c0_7], %0 {strides = array<i32>} : memref<36x48xf32, #tpu.memory_space<vmem>>, vector<1x48xf32>,
    %c1_8 = arith.constant 1 : index
    %c0_9 = arith.constant 0 : index
    %c0_10 = arith.constant 0 : index
    %9 = vector.load %arg1[%c1_8, %c0_9, %c0_10] : memref<2x16x48xbf16, #tpu.memory_space<vmem>>, vector<1x16x48xbf16>
    %10 = vector.shape_cast %9 : vector<1x16x48xbf16> to vector<16x48xbf16>
    %11 = arith.extf %10 : vector<16x48xbf16> to vector<16x48xf32>
    %c19 = arith.constant 19 : index
    %c0_11 = arith.constant 0 : index
    %12 = vector.load %arg7[%c19, %c0_11] : memref<36x48xf32, #tpu.memory_space<vmem>>, vector<16x48xf32>
    tpu.vector_store %arg7[%c19, %c0_11], %11 {strides = array<i32>} : memref<36x48xf32, #tpu.memory_space<vmem>>, vector<16x48xf32>,
    %cst_12 = arith.constant 0.000000e+00 : f32
    %13 = vector.broadcast %cst_12 : f32 to vector<34x256xf32>
    %c0_13 = arith.constant 0 : index
    %c0_14 = arith.constant 0 : index
    %14 = vector.load %arg7[%c0_13, %c0_14] : memref<36x48xf32, #tpu.memory_space<vmem>>, vector<34x48xf32>
    %15 = arith.truncf %14 : vector<34x48xf32> to vector<34x48xbf16>
    %c0_15 = arith.constant 0 : index
    %c0_16 = arith.constant 0 : index
    %c0_17 = arith.constant 0 : index
    %16 = vector.load %arg2[%c0_15, %c0_16, %c0_17] : memref<3x48x256xbf16, #tpu.memory_space<vmem>>, vector<1x48x256xbf16>
    %17 = vector.shape_cast %16 : vector<1x48x256xbf16> to vector<48x256xbf16>
    %cst_18 = arith.constant dense<0.000000e+00> : vector<34x256xf32>
    %18 = tpu.matmul %15, %17, %cst_18 {dimension_numbers = #tpu.dot_dimension_numbers<[1], [0], [0], [1], [0, 0, 1, 1], [], []>} : vector<34x48xbf16>, vector<48x256xbf16>, vector<34x256xf32> -> vector<34x256xf32>
    %19 = arith.addf %13, %18 : vector<34x256xf32>
    %c1_19 = arith.constant 1 : index
    %c0_20 = arith.constant 0 : index
    %20 = vector.load %arg7[%c1_19, %c0_20] : memref<36x48xf32, #tpu.memory_space<vmem>>, vector<34x48xf32>
    %21 = arith.truncf %20 : vector<34x48xf32> to vector<34x48xbf16>
    %c1_21 = arith.constant 1 : index
    %c0_22 = arith.constant 0 : index
    %c0_23 = arith.constant 0 : index
    %22 = vector.load %arg2[%c1_21, %c0_22, %c0_23] : memref<3x48x256xbf16, #tpu.memory_space<vmem>>, vector<1x48x256xbf16>
    %23 = vector.shape_cast %22 : vector<1x48x256xbf16> to vector<48x256xbf16>
    %cst_24 = arith.constant dense<0.000000e+00> : vector<34x256xf32>
    %24 = tpu.matmul %21, %23, %cst_24 {dimension_numbers = #tpu.dot_dimension_numbers<[1], [0], [0], [1], [0, 0, 1, 1], [], []>} : vector<34x48xbf16>, vector<48x256xbf16>, vector<34x256xf32> -> vector<34x256xf32>
    %25 = arith.addf %19, %24 : vector<34x256xf32>
    %c2 = arith.constant 2 : index
    %c0_25 = arith.constant 0 : index
    %26 = vector.load %arg7[%c2, %c0_25] : memref<36x48xf32, #tpu.memory_space<vmem>>, vector<34x48xf32>
    %27 = arith.truncf %26 : vector<34x48xf32> to vector<34x48xbf16>
    %c2_26 = arith.constant 2 : index
    %c0_27 = arith.constant 0 : index
    %c0_28 = arith.constant 0 : index
    %28 = vector.load %arg2[%c2_26, %c0_27, %c0_28] : memref<3x48x256xbf16, #tpu.memory_space<vmem>>, vector<1x48x256xbf16>
    %29 = vector.shape_cast %28 : vector<1x48x256xbf16> to vector<48x256xbf16>
    %cst_29 = arith.constant dense<0.000000e+00> : vector<34x256xf32>
    %30 = tpu.matmul %27, %29, %cst_29 {dimension_numbers = #tpu.dot_dimension_numbers<[1], [0], [0], [1], [0, 0, 1, 1], [], []>} : vector<34x48xbf16>, vector<48x256xbf16>, vector<34x256xf32> -> vector<34x256xf32>
    %31 = arith.addf %25, %30 : vector<34x256xf32>
    %c0_30 = arith.constant 0 : index
    %c0_31 = arith.constant 0 : index
    %32 = vector.load %arg4[%c0_30, %c0_31] : memref<1x256xf32, #tpu.memory_space<vmem>>, vector<1x256xf32>
    %33 = vector.broadcast %32 : vector<1x256xf32> to vector<34x256xf32>
    %34 = arith.addf %31, %33 : vector<34x256xf32>
    %cst_32 = arith.constant 1.000000e-01 : f32
    %35 = vector.broadcast %cst_32 : f32 to vector<34x256xf32>
    %36 = arith.mulf %35, %34 : vector<34x256xf32>
    %37 = arith.maximumf %34, %36 : vector<34x256xf32>
    %cst_33 = arith.constant 0.000000e+00 : f32
    %38 = vector.broadcast %cst_33 : f32 to vector<1x256xf32>
    %c0_34 = arith.constant 0 : index
    %c0_35 = arith.constant 0 : index
    %39 = vector.load %arg8[%c0_34, %c0_35] : memref<36x256xf32, #tpu.memory_space<vmem>>, vector<1x256xf32>
    tpu.vector_store %arg8[%c0_34, %c0_35], %38 {strides = array<i32>} : memref<36x256xf32, #tpu.memory_space<vmem>>, vector<1x256xf32>,
    %c17_36 = arith.constant 17 : index
    %c0_37 = arith.constant 0 : index
    %40 = vector.load %arg8[%c17_36, %c0_37] : memref<36x256xf32, #tpu.memory_space<vmem>>, vector<1x256xf32>
    tpu.vector_store %arg8[%c17_36, %c0_37], %38 {strides = array<i32>} : memref<36x256xf32, #tpu.memory_space<vmem>>, vector<1x256xf32>,
    %41 = vector.extract_strided_slice %37 {offsets = [0, 0], sizes = [16, 256], strides = [1, 1]} : vector<34x256xf32> to vector<16x256xf32>
    %c1_38 = arith.constant 1 : index
    %c0_39 = arith.constant 0 : index
    %42 = vector.load %arg8[%c1_38, %c0_39] : memref<36x256xf32, #tpu.memory_space<vmem>>, vector<16x256xf32>
    tpu.vector_store %arg8[%c1_38, %c0_39], %41 {strides = array<i32>} : memref<36x256xf32, #tpu.memory_space<vmem>>, vector<16x256xf32>,
    %c18_40 = arith.constant 18 : index
    %c0_41 = arith.constant 0 : index
    %43 = vector.load %arg8[%c18_40, %c0_41] : memref<36x256xf32, #tpu.memory_space<vmem>>, vector<1x256xf32>
    tpu.vector_store %arg8[%c18_40, %c0_41], %38 {strides = array<i32>} : memref<36x256xf32, #tpu.memory_space<vmem>>, vector<1x256xf32>,
    %c35_42 = arith.constant 35 : index
    %c0_43 = arith.constant 0 : index
    %44 = vector.load %arg8[%c35_42, %c0_43] : memref<36x256xf32, #tpu.memory_space<vmem>>, vector<1x256xf32>
    tpu.vector_store %arg8[%c35_42, %c0_43], %38 {strides = array<i32>} : memref<36x256xf32, #tpu.memory_space<vmem>>, vector<1x256xf32>,
    %45 = vector.extract_strided_slice %37 {offsets = [18, 0], sizes = [16, 256], strides = [1, 1]} : vector<34x256xf32> to vector<16x256xf32>
    %c19_44 = arith.constant 19 : index
    %c0_45 = arith.constant 0 : index
    %46 = vector.load %arg8[%c19_44, %c0_45] : memref<36x256xf32, #tpu.memory_space<vmem>>, vector<16x256xf32>
    tpu.vector_store %arg8[%c19_44, %c0_45], %45 {strides = array<i32>} : memref<36x256xf32, #tpu.memory_space<vmem>>, vector<16x256xf32>,
    %cst_46 = arith.constant 0.000000e+00 : f32
    %47 = vector.broadcast %cst_46 : f32 to vector<34x256xf32>
    %c0_47 = arith.constant 0 : index
    %c0_48 = arith.constant 0 : index
    %48 = vector.load %arg8[%c0_47, %c0_48] : memref<36x256xf32, #tpu.memory_space<vmem>>, vector<34x256xf32>
    %49 = arith.truncf %48 : vector<34x256xf32> to vector<34x256xbf16>
    %c0_49 = arith.constant 0 : index
    %c0_50 = arith.constant 0 : index
    %c0_51 = arith.constant 0 : index
    %50 = vector.load %arg3[%c0_49, %c0_50, %c0_51] : memref<3x256x256xbf16, #tpu.memory_space<vmem>>, vector<1x256x256xbf16>
    %51 = vector.shape_cast %50 : vector<1x256x256xbf16> to vector<256x256xbf16>
    %cst_52 = arith.constant dense<0.000000e+00> : vector<34x256xf32>
    %52 = tpu.matmul %49, %51, %cst_52 {dimension_numbers = #tpu.dot_dimension_numbers<[1], [0], [0], [1], [0, 0, 1, 1], [], []>} : vector<34x256xbf16>, vector<256x256xbf16>, vector<34x256xf32> -> vector<34x256xf32>
    %53 = arith.addf %47, %52 : vector<34x256xf32>
    %c1_53 = arith.constant 1 : index
    %c0_54 = arith.constant 0 : index
    %54 = vector.load %arg8[%c1_53, %c0_54] : memref<36x256xf32, #tpu.memory_space<vmem>>, vector<34x256xf32>
    %55 = arith.truncf %54 : vector<34x256xf32> to vector<34x256xbf16>
    %c1_55 = arith.constant 1 : index
    %c0_56 = arith.constant 0 : index
    %c0_57 = arith.constant 0 : index
    %56 = vector.load %arg3[%c1_55, %c0_56, %c0_57] : memref<3x256x256xbf16, #tpu.memory_space<vmem>>, vector<1x256x256xbf16>
    %57 = vector.shape_cast %56 : vector<1x256x256xbf16> to vector<256x256xbf16>
    %cst_58 = arith.constant dense<0.000000e+00> : vector<34x256xf32>
    %58 = tpu.matmul %55, %57, %cst_58 {dimension_numbers = #tpu.dot_dimension_numbers<[1], [0], [0], [1], [0, 0, 1, 1], [], []>} : vector<34x256xbf16>, vector<256x256xbf16>, vector<34x256xf32> -> vector<34x256xf32>
    %59 = arith.addf %53, %58 : vector<34x256xf32>
    %c2_59 = arith.constant 2 : index
    %c0_60 = arith.constant 0 : index
    %60 = vector.load %arg8[%c2_59, %c0_60] : memref<36x256xf32, #tpu.memory_space<vmem>>, vector<34x256xf32>
    %61 = arith.truncf %60 : vector<34x256xf32> to vector<34x256xbf16>
    %c2_61 = arith.constant 2 : index
    %c0_62 = arith.constant 0 : index
    %c0_63 = arith.constant 0 : index
    %62 = vector.load %arg3[%c2_61, %c0_62, %c0_63] : memref<3x256x256xbf16, #tpu.memory_space<vmem>>, vector<1x256x256xbf16>
    %63 = vector.shape_cast %62 : vector<1x256x256xbf16> to vector<256x256xbf16>
    %cst_64 = arith.constant dense<0.000000e+00> : vector<34x256xf32>
    %64 = tpu.matmul %61, %63, %cst_64 {dimension_numbers = #tpu.dot_dimension_numbers<[1], [0], [0], [1], [0, 0, 1, 1], [], []>} : vector<34x256xbf16>, vector<256x256xbf16>, vector<34x256xf32> -> vector<34x256xf32>
    %65 = arith.addf %59, %64 : vector<34x256xf32>
    %c0_65 = arith.constant 0 : index
    %c0_66 = arith.constant 0 : index
    %66 = vector.load %arg5[%c0_65, %c0_66] : memref<1x256xf32, #tpu.memory_space<vmem>>, vector<1x256xf32>
    %67 = vector.broadcast %66 : vector<1x256xf32> to vector<34x256xf32>
    %68 = arith.addf %65, %67 : vector<34x256xf32>
    %cst_67 = arith.constant 1.000000e-01 : f32
    %69 = vector.broadcast %cst_67 : f32 to vector<34x256xf32>
    %70 = arith.mulf %69, %68 : vector<34x256xf32>
    %71 = arith.maximumf %68, %70 : vector<34x256xf32>
    %72 = vector.extract_strided_slice %71 {offsets = [0, 0], sizes = [16, 256], strides = [1, 1]} : vector<34x256xf32> to vector<16x256xf32>
    %c0_68 = arith.constant 0 : index
    %c0_69 = arith.constant 0 : index
    %c0_70 = arith.constant 0 : index
    %73 = vector.load %arg6[%c0_68, %c0_69, %c0_70] : memref<2x16x256xf32, #tpu.memory_space<vmem>>, vector<1x16x256xf32>
    %74 = vector.shape_cast %73 : vector<1x16x256xf32> to vector<16x256xf32>
    %75 = vector.shape_cast %72 : vector<16x256xf32> to vector<1x16x256xf32>
    tpu.vector_store %arg6[%c0_68, %c0_69, %c0_70], %75 {strides = array<i32>} : memref<2x16x256xf32, #tpu.memory_space<vmem>>, vector<1x16x256xf32>,
    %76 = vector.extract_strided_slice %71 {offsets = [18, 0], sizes = [16, 256], strides = [1, 1]} : vector<34x256xf32> to vector<16x256xf32>
    %c1_71 = arith.constant 1 : index
    %c0_72 = arith.constant 0 : index
    %c0_73 = arith.constant 0 : index
    %77 = vector.load %arg6[%c1_71, %c0_72, %c0_73] : memref<2x16x256xf32, #tpu.memory_space<vmem>>, vector<1x16x256xf32>
    %78 = vector.shape_cast %77 : vector<1x16x256xf32> to vector<16x256xf32>
    %79 = vector.shape_cast %76 : vector<16x256xf32> to vector<1x16x256xf32>
    tpu.vector_store %arg6[%c1_71, %c0_72, %c0_73], %79 {strides = array<i32>} : memref<2x16x256xf32, #tpu.memory_space<vmem>>, vector<1x16x256xf32>,
    return
  }
  func.func @transform_0(%arg0: i32) -> (i32, i32, i32) {
    %c0_i32 = arith.constant 0 : i32
    %c0_i32_0 = arith.constant 0 : i32
    %c0_i32_1 = arith.constant 0 : i32
    return %arg0, %c0_i32, %c0_i32_0 : i32, i32, i32
  }
  func.func @transform_1(%arg0: i32) -> (i32, i32, i32) {
    %c0_i32 = arith.constant 0 : i32
    %c0_i32_0 = arith.constant 0 : i32
    %c0_i32_1 = arith.constant 0 : i32
    %c0_i32_2 = arith.constant 0 : i32
    return %c0_i32, %c0_i32_0, %c0_i32_1 : i32, i32, i32
  }
  func.func @transform_2(%arg0: i32) -> (i32, i32, i32) {
    %c0_i32 = arith.constant 0 : i32
    %c0_i32_0 = arith.constant 0 : i32
    %c0_i32_1 = arith.constant 0 : i32
    %c0_i32_2 = arith.constant 0 : i32
    return %c0_i32, %c0_i32_0, %c0_i32_1 : i32, i32, i32
  }
  func.func @transform_3(%arg0: i32) -> (i32, i32) {
    %c0_i32 = arith.constant 0 : i32
    %c0_i32_0 = arith.constant 0 : i32
    %c0_i32_1 = arith.constant 0 : i32
    return %c0_i32, %c0_i32_0 : i32, i32
  }
  func.func @transform_4(%arg0: i32) -> (i32, i32) {
    %c0_i32 = arith.constant 0 : i32
    %c0_i32_0 = arith.constant 0 : i32
    %c0_i32_1 = arith.constant 0 : i32
    return %c0_i32, %c0_i32_0 : i32, i32
  }
  func.func @transform_5(%arg0: i32) -> (i32, i32, i32) {
    %c0_i32 = arith.constant 0 : i32
    %c0_i32_0 = arith.constant 0 : i32
    %c0_i32_1 = arith.constant 0 : i32
    return %arg0, %c0_i32, %c0_i32_0 : i32, i32, i32
  }
}

</mosaic_0001>

<bundles_post_ra>
// kernel: stem_forward.1
= control target key start
LH: loop header
LB: loop body
LE: loop exit
PB: predicated region body
PF: predicated region fallthrough
CT: control target
= control target key end

     0   :  { %10 = vsyncpa [#allocation5], 0  ;;  %s1820_s18 = smov [#allocation4]   ;;  %s2062_s0 = inlined_call_operand.vmem [shape: bf16[2,16,48], index: 0, kind: input, shape index: {}]   ;;  %s2063_s1 = inlined_call_operand.vmem [shape: bf16[3,48,256], index: 1, kind: input, shape index: {}]   ;;  %s2064_s2 = inlined_call_operand.hbm [shape: bf16[3,256,256], index: 2, kind: input, shape index: {}]   ;;  %s2065_s3 = inlined_call_operand.vmem [shape: f32[1,256], index: 3, kind: input, shape index: {}]   ;;  %s2066_s4 = inlined_call_operand.vmem [shape: f32[1,256], index: 4, kind: input, shape index: {}]   ;;  %s2067_s5 = inlined_call_operand.vmem [shape: f32[2,16,256], index: 5, kind: output, shape index: {}]  }
   0x1   :  { %s20_s19 = sshll.u32 %s1820_s18, 4  ;;  %s21_s19 = int_to_ptr.vmem [resolvable:$true] %s20_s19 }
   0x2   :  { %s1806_s20 = scalar_lea.vmem %s21_s19, 12288  ;;  %p1811_p1 = scmp.lt.s32.totalorder %s21_s19, %s21_s19 }
   0x3   :  { %p1807_p0 = scmp.ne.s32.totalorder %s21_s19, %s1806_s20  ;;  %p1812_p2 = scmp.lt.s32.totalorder %s1806_s20, %s1806_s20 }
   0x5   :  { %p1813_p3 = por %p1812_p2, %p1811_p1 }
   0x7   :  { %p1814_p4 = pnand %p1813_p3, %p1807_p0 }
   0x9   :  { %1817 = shalt.err (!%p1814_p4)
}
   0xa   :  { %s1821_s21 = smov 128   ;;  %s1822_s22 = smov 8  }
   0xb   :  { %26 = dma.hbm_to_vmem [thread:$0]  %s2064_s2, 12288, %s21_s19, [#allocation5], %s1821_s21, %s1821_s21, %s1822_s22  }
   0xc   :  { %1818 = dma.done.wait [#allocation5], 12288  }
   0xd   :  { %1819 = vsyncadd [#allocation5], 4294955008  ;;  %vm35_vm0 = vcmask 385024   ;;  %v1823_v0 = vmov 0   ;;  %v1824_v1 = vmov 0.0   ;;  %v1614_v7 = vld [vmem:[%s2062_s0] sm:$0xff]  }
   0xe   :  { %154 = vmatprep.mubr.bf16.mxu0 %v1823_v0  ;;  %36 = vst.msk [vmem:[#allocation2] sm:$0x1] %vm35_vm0, %v1824_v1  ;;  %37 = vst.msk [vmem:[#allocation2 + $0x11] sm:$0x1] %vm35_vm0, %v1824_v1  ;;  %v1627_v2 = vld [vmem:[%s2063_s1 + $0x54] ss:$8 sps:$4 sm:$0xff]   ;;  %v1615_v8 = vunpack.c.l.bf16 %v1614_v7  ;;  %v1616_v9 = vunpack.c.h.bf16 %v1614_v7 }
   0xf   :  { %45 = vst.msk [vmem:[#allocation2 + $0x12] sm:$0x1] %vm35_vm0, %v1824_v1  ;;  %46 = vst.msk [vmem:[#allocation2 + $0x23] sm:$0x1] %vm35_vm0, %v1824_v1  ;;  %v1629_v3 = vld [vmem:[%s2063_s1 + $0x50] ss:$8 sps:$4 sm:$0xff]   ;;  %132 = vmatprep.subr.bf16.mxu0 %v1627_v2 }
  0x10   :  { %v1630_v4 = vld [vmem:[%s2063_s1 + $0x44] ss:$8 sps:$4 sm:$0xff]   ;;  %133 = vmatpush1.bf16.msra.mxu0 %v1629_v3  ;;  %v1632_v5 = vld [vmem:[%s2063_s1 + $0x40] ss:$8 sps:$4 sm:$0xff]   ;;  %v1633_v6 = vld [vmem:[%s2063_s1 + $0x34] ss:$8 sps:$4 sm:$0xff]  }
  0x11   :  { %134 = vmatprep.subr.bf16.mxu0 %v1630_v4  ;;  %vm42_vm1 = vcmask 392192   ;;  %v1621_v10 = vld [vmem:[%s2062_s0 + $0x8] sm:$0xff]   ;;  %v1635_v13 = vld [vmem:[%s2063_s1 + $0x30] ss:$8 sps:$4 sm:$0xff]   ;;  %v1641_v19 = vld [vmem:[%s2063_s1 + $0x14] ss:$8 sps:$4 sm:$0xff]  }
  0x12   :  { %v1619_v11 = vunpack.c.l.bf16 %v1621_v10  ;;  %v1620_v12 = vunpack.c.h.bf16 %v1621_v10  ;;  %43 = vst.msk [vmem:[#allocation2 + $0x1] sm:$0xff] %vm42_vm1, %v1615_v8  ;;  %44 = vst.msk [vmem:[#allocation2 + $0x9] sm:$0xff] %vm42_vm1, %v1616_v9  ;;  %v1638_v14 = vld [vmem:[%s2063_s1 + $0x24] ss:$8 sps:$4 sm:$0xff]   ;;  %v1636_v17 = vld [vmem:[%s2063_s1 + $0x20] ss:$8 sps:$4 sm:$0xff]  }
  0x13   :  { %v1639_v20 = vld [vmem:[%s2063_s1 + $0x10] ss:$8 sps:$4 sm:$0xff]   ;;  %v1644_v23 = vld [vmem:[%s2063_s1 + $0x4] ss:$8 sps:$4 sm:$0xff]   ;;  %v1642_v24 = vld [vmem:[%s2063_s1] ss:$8 sps:$4 sm:$0xff]  }
  0x14   :  { %135 = vmatpush1.bf16.msra.mxu0 %v1632_v5  ;;  %52 = vst.msk [vmem:[#allocation2 + $0x13] sm:$0xff] %vm42_vm1, %v1619_v11  ;;  %53 = vst.msk [vmem:[#allocation2 + $0x1b] sm:$0xff] %vm42_vm1, %v1620_v12  ;;  %v1647_v26 = vld [vmem:[%s2063_s1 + $0x84] ss:$8 sps:$4 sm:$0xff]   ;;  %v1645_v31 = vld [vmem:[%s2063_s1 + $0x80] ss:$8 sps:$4 sm:$0xff]  }
  0x15   :  { %136 = vmatprep.subr.bf16.mxu0 %v1633_v6  ;;  %v1650_v33 = vld [vmem:[%s2063_s1 + $0x74] ss:$8 sps:$4 sm:$0xff]   ;;  %v1648_v36 = vld [vmem:[%s2063_s1 + $0x70] ss:$8 sps:$4 sm:$0xff]   ;;  %v1653_v37 = vld [vmem:[%s2063_s1 + $0x64] ss:$8 sps:$4 sm:$0xff]  }
  0x16   :  { %v1651_v38 = vld [vmem:[%s2063_s1 + $0x60] ss:$8 sps:$4 sm:$0xff]   ;;  %v1656_v50 = vld [vmem:[#allocation4 + $0x74] ss:$8 sps:$4 sm:$0xff]   ;;  %v1659_v52 = vld [vmem:[#allocation4 + $0x64] ss:$8 sps:$4 sm:$0xff]  }
  0x17   :  { %v1654_v51 = vld [vmem:[#allocation4 + $0x70] ss:$8 sps:$4 sm:$0xff]   ;;  %v1657_v53 = vld [vmem:[#allocation4 + $0x60] ss:$8 sps:$4 sm:$0xff]   ;;  %v1662_v54 = vld [vmem:[#allocation4 + $0x54] ss:$8 sps:$4 sm:$0xff]  }
  0x18   :  { %137 = vmatpush1.bf16.msra.mxu0 %v1635_v13  ;;  %v1660_v55 = vld [vmem:[#allocation4 + $0x50] ss:$8 sps:$4 sm:$0xff]   ;;  %v1663_v56 = vld [vmem:[#allocation4 + $0x174] ss:$8 sps:$4 sm:$0xff]   ;;  %v1667_v57 = vld [vmem:[#allocation4 + $0x44] ss:$8 sps:$4 sm:$0xff]  }
  0x19   :  { %232 = vmatprep.subr.bf16.mxu0 %v1638_v14  ;;  %v68_v15 = vld [vmem:[#allocation2 + $0x1] sm:$0xff]  ;;  %v69_v16 = vld [vmem:[#allocation2 + $0x9] sm:$0xff]  ;;  %818 = vmatprep.subr.bf16.mxu1 %v1663_v56  ;;  %vm463_vm3 = vcmask 1040384   ;;  %vm1147_vm4 = vcmask 1046528   ;;  %vm605_vm5 = vsmask.f32 7424 }
  0x1a   :  { %v73_v18 = vpack.c.bf16 %v69_v16, %v68_v15  ;;  %v54_v29 = vld [vmem:[#allocation2] sm:$0xff]  ;;  %v55_v30 = vld [vmem:[#allocation2 + $0x8] sm:$0xff]  ;;  %vm1447_vm6 = vcmask 1045504  }
  0x1b   :  { %v70_v21 = vld [vmem:[#allocation2 + $0x11] sm:$0xff]  ;;  %v71_v22 = vld [vmem:[#allocation2 + $0x19] sm:$0xff]  ;;  %v72_v27 = vld [vmem:[#allocation2 + $0x21] sm:$0x3]  ;;  %v59_v32 = vpack.c.bf16 %v55_v30, %v54_v29  ;;  %v410_v29 = vlaneseq }
  0x1c   :  { %1486 = vmatmul.mubr.msk.bf16.vlgmr.msra.gmra.mxu0 %vm42_vm1, %v73_v18  ;;  %v74_v25 = vpack.c.bf16 %v71_v22, %v70_v21  ;;  %v75_v28 = vpack.c.bf16 %v72_v27, %v72_v27  ;;  %v56_v34 = vld [vmem:[#allocation2 + $0x10] sm:$0xff]  ;;  %v57_v35 = vld [vmem:[#allocation2 + $0x18] sm:$0xff]  ;;  %v58_v40 = vld [vmem:[#allocation2 + $0x20] sm:$0x3] }
  0x1d   :  { %233 = vmatpush1.bf16.msra.mxu0 %v1636_v17  ;;  %164 = vmatprep.mubr.bf16.mxu0 %v1823_v0  ;;  %v60_v39 = vpack.c.bf16 %v57_v35, %v56_v34  ;;  %v61_v41 = vpack.c.bf16 %v58_v40, %v58_v40  ;;  %v283_v42 = vld [vmem:[#allocation2 + $0x2] sm:$0xff]  ;;  %v284_v43 = vld [vmem:[#allocation2 + $0xa] sm:$0xff]  ;;  %v285_v45 = vld [vmem:[#allocation2 + $0x12] sm:$0xff]  ;;  %vm452_vm2 = vcmp.lt.s32.totalorder %v410_v29, 256 }
  0x1e   :  { %234 = vmatprep.subr.bf16.mxu0 %v1641_v19  ;;  %v288_v44 = vpack.c.bf16 %v284_v43, %v283_v42  ;;  %v286_v46 = vld [vmem:[#allocation2 + $0x1a] sm:$0xff]  ;;  %v287_v48 = vld [vmem:[#allocation2 + $0x22] sm:$0x3]  ;;  %v1668_v59 = vld [vmem:[#allocation4 + $0x170] ss:$8 sps:$4 sm:$0xff]  }
  0x1f   :  { %v289_v47 = vpack.c.bf16 %v286_v46, %v285_v45  ;;  %v290_v49 = vpack.c.bf16 %v287_v48, %v287_v48  ;;  %v1665_v58 = vld [vmem:[#allocation4 + $0x40] ss:$8 sps:$4 sm:$0xff]   ;;  %819 = vmatpush1.bf16.msra.mxu1 %v1668_v59  ;;  %v1669_v60 = vld [vmem:[#allocation4 + $0x164] ss:$8 sps:$4 sm:$0xff]   ;;  %v1673_v61 = vld [vmem:[#allocation4 + $0x34] ss:$8 sps:$4 sm:$0xff]  }
  0x20   :  { %v1671_v62 = vld [vmem:[#allocation4 + $0x30] ss:$8 sps:$4 sm:$0xff]   ;;  %v1674_v63 = vld [vmem:[#allocation4 + $0x160] ss:$8 sps:$4 sm:$0xff]   ;;  %820 = vmatprep.subr.bf16.mxu1 %v1669_v60  ;;  %v1679_v2 = vld [vmem:[#allocation4 + $0x24] ss:$8 sps:$4 sm:$0xff]  }
  0x21   :  { %235 = vmatpush1.bf16.msra.mxu0 %v1639_v20  ;;  %v1677_v3 = vld [vmem:[#allocation4 + $0x20] ss:$8 sps:$4 sm:$0xff]   ;;  %v1680_v4 = vld [vmem:[#allocation4 + $0x150] ss:$8 sps:$4 sm:$0xff]   ;;  %v1681_v5 = vld [vmem:[#allocation4 + $0x144] ss:$8 sps:$4 sm:$0xff]  }
  0x22   :  { %236 = vmatprep.subr.bf16.mxu0 %v1644_v23  ;;  %v1685_v6 = vld [vmem:[#allocation4 + $0x14] ss:$8 sps:$4 sm:$0xff]   ;;  %v1683_v7 = vld [vmem:[#allocation4 + $0x10] ss:$8 sps:$4 sm:$0xff]   ;;  %v1686_v8 = vld [vmem:[#allocation4 + $0x140] ss:$8 sps:$4 sm:$0xff]  }
  0x23   :  { %821 = vmatpush1.bf16.msra.mxu1 %v1674_v63  ;;  %v1687_v9 = vld [vmem:[#allocation4 + $0x134] ss:$8 sps:$4 sm:$0xff]   ;;  %v1691_v10 = vld [vmem:[#allocation4 + $0x4] ss:$8 sps:$4 sm:$0xff]   ;;  %v1689_v11 = vld [vmem:[#allocation4] ss:$8 sps:$4 sm:$0xff]  }
  0x24   :  { %1487 = vmatmul.mubr.msk.bf16.gmra.mxu0 %vm42_vm1, %v74_v25  ;;  %v1692_v12 = vld [vmem:[#allocation4 + $0x130] ss:$8 sps:$4 sm:$0xff]   ;;  %v1693_v13 = vld [vmem:[#allocation4 + $0x124] ss:$8 sps:$4 sm:$0xff]   ;;  %v1697_v14 = vld [vmem:[#allocation4 + $0xf4] ss:$8 sps:$4 sm:$0xff]  }
  0x25   :  { %174 = vmatprep.mubr.bf16.mxu0 %v1823_v0  ;;  %237 = vmatpush1.bf16.msra.mxu0 %v1642_v24  ;;  %v1695_v15 = vld [vmem:[#allocation4 + $0xf0] ss:$8 sps:$4 sm:$0xff]   ;;  %v1698_v16 = vld [vmem:[#allocation4 + $0x120] ss:$8 sps:$4 sm:$0xff]   ;;  %v1699_v17 = vld [vmem:[#allocation4 + $0x114] ss:$8 sps:$4 sm:$0xff]  }
  0x26   :  { %347 = vmatprep.subr.bf16.mxu0 %v1647_v26  ;;  %v1703_v18 = vld [vmem:[#allocation4 + $0xe4] ss:$8 sps:$4 sm:$0xff]   ;;  %v1701_v19 = vld [vmem:[#allocation4 + $0xe0] ss:$8 sps:$4 sm:$0xff]   ;;  %v1704_v20 = vld [vmem:[#allocation4 + $0x110] ss:$8 sps:$4 sm:$0xff]  }
  0x27   :  { %v1705_v21 = vld [vmem:[#allocation4 + $0x104] ss:$8 sps:$4 sm:$0xff]   ;;  %v1709_v22 = vld [vmem:[#allocation4 + $0xd4] ss:$8 sps:$4 sm:$0xff]   ;;  %v1707_v23 = vld [vmem:[#allocation4 + $0xd0] ss:$8 sps:$4 sm:$0xff]  }
  0x28   :  { %v1710_v24 = vld [vmem:[#allocation4 + $0x100] ss:$8 sps:$4 sm:$0xff]   ;;  %v1711_v25 = vld [vmem:[#allocation4 + $0x1f4] ss:$8 sps:$4 sm:$0xff]   ;;  %v1715_v26 = vld [vmem:[#allocation4 + $0xc4] ss:$8 sps:$4 sm:$0xff]  }
  0x29   :  { %v1713_v27 = vld [vmem:[#allocation4 + $0xc0] ss:$8 sps:$4 sm:$0xff]   ;;  %v1717_v30 = vld [vmem:[#allocation4 + $0x1e4] ss:$8 sps:$4 sm:$0xff]   ;;  %v1723_v34 = vld [vmem:[#allocation4 + $0x1d4] ss:$8 sps:$4 sm:$0xff]  }
  0x2a   :  { %454 = vst.msk [vmem:[#allocation3] ss:$8 sm:$0x3] %vm452_vm2, %v1824_v1  ;;  %457 = vst.msk [vmem:[#allocation3 + $0x21] ss:$8 sm:$0x3] %vm452_vm2, %v1824_v1 }
  0x2b   :  { %483 = vst.msk [vmem:[#allocation3 + $0x22] ss:$8 sm:$0x3] %vm452_vm2, %v1824_v1  ;;  %486 = vst.msk [vmem:[#allocation3 + $0x43] ss:$8 sm:$0x3] %vm452_vm2, %v1824_v1 }
  0x2c   :  { %1488 = vmatmul.mubr.msk.bf16.gmra.mxu0 %vm42_vm1, %v75_v28  ;;  %v1716_v28 = vld [vmem:[#allocation4 + $0x1f0] ss:$8 sps:$4 sm:$0xff]   ;;  %v1727_v35 = vld [vmem:[#allocation4 + $0xa4] ss:$8 sps:$4 sm:$0xff]   ;;  %v1735_v1 = vld [vmem:[#allocation4 + $0x1b4] ss:$8 sps:$4 sm:$0xff]  }
  0x2d   :  { %254 = vmatprep.mubr.bf16.mxu0 %v1823_v0  ;;  %v1731_v40 = vld [vmem:[#allocation4 + $0x90] ss:$8 sps:$4 sm:$0xff]   ;;  %v1739_v42 = vld [vmem:[#allocation4 + $0x84] ss:$8 sps:$4 sm:$0xff]   ;;  %v1737_v43 = vld [vmem:[#allocation4 + $0x80] ss:$8 sps:$4 sm:$0xff]  }
  0x2e   :  { %v1741_v45 = vld [vmem:[#allocation4 + $0x1a4] ss:$8 sps:$4 sm:$0xff]   ;;  %v1743_v46 = vld [vmem:[#allocation4 + $0x1a0] ss:$8 sps:$4 sm:$0xff]   ;;  %v1746_v48 = vld [vmem:[#allocation4 + $0x190] ss:$8 sps:$4 sm:$0xff]  }
  0x34   :  { %1495 = vmatmul.mubr.msk.bf16.vlgmr.msra.gmra.mxu0 %vm42_vm1, %v59_v32  ;;  %v1719_v32 = vld [vmem:[#allocation4 + $0xb0] ss:$8 sps:$4 sm:$0xff]  }
  0x35   :  { %348 = vmatpush1.bf16.msra.mxu0 %v1645_v31  ;;  %264 = vmatprep.mubr.bf16.mxu0 %v1823_v0  ;;  %v1721_v31 = vld [vmem:[#allocation4 + $0xb4] ss:$8 sps:$4 sm:$0xff]  }
  0x36   :  { %349 = vmatprep.subr.bf16.mxu0 %v1650_v33  ;;  %v1722_v33 = vld [vmem:[#allocation4 + $0x1e0] ss:$8 sps:$4 sm:$0xff]  }
  0x39   :  { %350 = vmatpush1.bf16.msra.mxu0 %v1648_v36  ;;  %v1725_v36 = vld [vmem:[#allocation4 + $0xa0] ss:$8 sps:$4 sm:$0xff]  }
  0x3a   :  { %351 = vmatprep.subr.bf16.mxu0 %v1653_v37  ;;  %v1728_v37 = vld [vmem:[#allocation4 + $0x1d0] ss:$8 sps:$4 sm:$0xff]  }
  0x3c   :  { %1496 = vmatmul.mubr.msk.bf16.gmra.mxu0 %vm42_vm1, %v60_v39  ;;  %v1733_v39 = vld [vmem:[#allocation4 + $0x94] ss:$8 sps:$4 sm:$0xff]  }
  0x3d   :  { %274 = vmatprep.mubr.bf16.mxu0 %v1823_v0  ;;  %352 = vmatpush1.bf16.msra.mxu0 %v1651_v38  ;;  %v1729_v38 = vld [vmem:[#allocation4 + $0x1c4] ss:$8 sps:$4 sm:$0xff]  }
  0x3e   :  { %1039 = vmatprep.subr.bf16.mxu0 %v1656_v50  ;;  %v1749_v50 = vld [vmem:[#allocation4 + $0x180] ss:$8 sps:$4 sm:$0xff]  }
  0x44   :  { %1497 = vmatmul.mubr.msk.bf16.gmra.mxu0 %vm42_vm1, %v61_v41  ;;  %v1734_v41 = vld [vmem:[#allocation4 + $0x1c0] ss:$8 sps:$4 sm:$0xff]  }
  0x45   :  { %369 = vmatprep.mubr.bf16.mxu0 %v1823_v0 }
  0x4c   :  { %1510 = vmatmul.mubr.msk.bf16.vlgmr.msra.gmra.mxu0 %vm42_vm1, %v288_v44  ;;  %v1740_v44 = vld [vmem:[#allocation4 + $0x1b0] ss:$8 sps:$4 sm:$0xff]  }
  0x4d   :  { %379 = vmatprep.mubr.bf16.mxu0 %v1823_v0  ;;  %1040 = vmatpush1.bf16.msra.mxu0 %v1654_v51  ;;  %v1752_v51 = vld [vmem:[#allocation4 + $0x274] ss:$8 sps:$4 sm:$0xff]  }
  0x4e   :  { %1041 = vmatprep.subr.bf16.mxu0 %v1659_v52 }
  0x51   :  { %1042 = vmatpush1.bf16.msra.mxu0 %v1657_v53 }
  0x52   :  { %1043 = vmatprep.subr.bf16.mxu0 %v1662_v54 }
  0x54   :  { %1511 = vmatmul.mubr.msk.bf16.gmra.mxu0 %vm42_vm1, %v289_v47  ;;  %v1744_v47 = vld [vmem:[#allocation4 + $0x194] ss:$8 sps:$4 sm:$0xff]  }
  0x55   :  { %389 = vmatprep.mubr.bf16.mxu0 %v1823_v0  ;;  %1044 = vmatpush1.bf16.msra.mxu0 %v1660_v55  ;;  %v1675_v0 = vld [vmem:[#allocation4 + $0x154] ss:$8 sps:$4 sm:$0xff]  }
  0x56   :  { %1045 = vmatprep.subr.bf16.mxu0 %v1667_v57  ;;  %822 = vmatprep.subr.bf16.mxu1 %v1675_v0 }
  0x57   :  { %823 = vmatpush1.bf16.msra.mxu1 %v1680_v4 }
  0x58   :  { %824 = vmatprep.subr.bf16.mxu1 %v1681_v5 }
  0x59   :  { %1046 = vmatpush1.bf16.msra.mxu0 %v1665_v58 }
  0x5a   :  { %1047 = vmatprep.subr.bf16.mxu0 %v1673_v61 }
  0x5b   :  { %825 = vmatpush1.bf16.msra.mxu1 %v1686_v8 }
  0x5c   :  { %1512 = vmatmul.mubr.msk.bf16.gmra.mxu0 %vm42_vm1, %v290_v49  ;;  %826 = vmatprep.subr.bf16.mxu1 %v1687_v9  ;;  %v1747_v49 = vld [vmem:[#allocation4 + $0x184] ss:$8 sps:$4 sm:$0xff]   ;;  %v1956_v9 = vshrl.u32 %v410_v29, 7 }
  0x5d   :  { %1048 = vmatpush1.bf16.msra.mxu0 %v1671_v62 }
  0x5e   :  { %1049 = vmatprep.subr.bf16.mxu0 %v1679_v2 }
  0x5f   :  { %827 = vmatpush1.bf16.msra.mxu1 %v1692_v12  ;;  %v412_v12 = vsub.s32 0, %v1956_v9 }
  0x60   :  { %828 = vmatprep.subr.bf16.mxu1 %v1693_v13 }
  0x61   :  { %1050 = vmatpush1.bf16.msra.mxu0 %v1677_v3 }
  0x62   :  { %1051 = vmatprep.subr.bf16.mxu0 %v1685_v6 }
  0x63   :  { %829 = vmatpush1.bf16.msra.mxu1 %v1698_v16 }
  0x64   :  { %830 = vmatprep.subr.bf16.mxu1 %v1699_v17 }
  0x65   :  { %1052 = vmatpush1.bf16.msra.mxu0 %v1683_v7 }
  0x66   :  { %1053 = vmatprep.subr.bf16.mxu0 %v1691_v10 }
  0x67   :  { %831 = vmatpush1.bf16.msra.mxu1 %v1704_v20 }
  0x68   :  { %832 = vmatprep.subr.bf16.mxu1 %v1705_v21 }
  0x69   :  { %1054 = vmatpush1.bf16.msra.mxu0 %v1689_v11 }
  0x6a   :  { %1055 = vmatprep.subr.bf16.mxu0 %v1697_v14  ;;  %v408_v14 = vld [vmem:[%s2065_s3] sm:$0x3] }
  0x6b   :  { %833 = vmatpush1.bf16.msra.mxu1 %v1710_v24 }
  0x6c   :  { %834 = vmatprep.subr.bf16.mxu1 %v1711_v25 }
  0x6d   :  { %1056 = vmatpush2.bf16.msra.mxu0 %v1695_v15  ;;  %v416_v15 = vsub.s32 1, %v1956_v9 }
  0x6e   :  { %1057 = vmatprep.subr.bf16.mxu0 %v1703_v18  ;;  %v1965_v18 = vrot.slane %v408_v14, %v412_v12 }
  0x6f   :  { %835 = vmatpush2.bf16.msra.mxu1 %v1716_v28 }
  0x70   :  { %836 = vmatprep.subr.bf16.mxu1 %v1717_v30 }
  0x71   :  { %1058 = vmatpush2.bf16.msra.mxu0 %v1701_v19 }
  0x72   :  { %1059 = vmatprep.subr.bf16.mxu0 %v1709_v22  ;;  %v1969_v22 = vrot.slane %v408_v14, %v416_v15 }
  0x73   :  { %837 = vmatpush2.bf16.msra.mxu1 %v1722_v33 }
  0x74   :  { %838 = vmatprep.subr.bf16.mxu1 %v1723_v34 }
  0x75   :  { %1060 = vmatpush2.bf16.msra.mxu0 %v1707_v23 }
  0x76   :  { %1061 = vmatprep.subr.bf16.mxu0 %v1715_v26 }
  0x77   :  { %839 = vmatpush2.bf16.msra.mxu1 %v1728_v37 }
  0x78   :  { %840 = vmatprep.subr.bf16.mxu1 %v1729_v38 }
  0x79   :  { %1062 = vmatpush2.bf16.msra.mxu0 %v1713_v27 }
  0x7a   :  { %1063 = vmatprep.subr.bf16.mxu0 %v1721_v31 }
  0x7b   :  { %841 = vmatpush2.bf16.msra.mxu1 %v1734_v41 }
  0x7c   :  { %842 = vmatprep.subr.bf16.mxu1 %v1735_v1 }
  0x7d   :  { %1064 = vmatpush2.bf16.msra.mxu0 %v1719_v32 }
  0x7e   :  { %1065 = vmatprep.subr.bf16.mxu0 %v1727_v35 }
  0x7f   :  { %843 = vmatpush2.bf16.msra.mxu1 %v1740_v44 }
  0x80   :  { %844 = vmatprep.subr.bf16.mxu1 %v1741_v45 }
  0x81   :  { %1066 = vmatpush2.bf16.msra.mxu0 %v1725_v36 }
  0x82   :  { %1067 = vmatprep.subr.bf16.mxu0 %v1733_v39 }
  0x83   :  { %845 = vmatpush2.bf16.msra.mxu1 %v1743_v46 }
  0x84   :  { %846 = vmatprep.subr.bf16.mxu1 %v1744_v47 }
  0x85   :  { %1068 = vmatpush2.bf16.msra.mxu0 %v1731_v40 }
  0x86   :  { %1069 = vmatprep.subr.bf16.mxu0 %v1739_v42 }
  0x87   :  { %847 = vmatpush2.bf16.msra.mxu1 %v1746_v48 }
  0x88   :  { %848 = vmatprep.subr.bf16.mxu1 %v1747_v49 }
  0x89   :  { %1070 = vmatpush2.bf16.msra.mxu0 %v1737_v43 }
  0x8b   :  { %849 = vmatpush2.bf16.msra.mxu1 %v1749_v50 }
  0x8c   :  { %1324 = vmatprep.subr.bf16.mxu1 %v1752_v51 }
  0xdc   :  { %v156_v52 = vpop.f32.mrf.mxu0 }
  0xde   :  { %v158_v53 = vpop.f32.mrf.mxu0 }
  0xe0   :  { %v160_v54 = vpop.f32.mrf.mxu0 }
  0xe2   :  { %v162_v55 = vpop.f32.mrf.mxu0 }
  0xe4   :  { %v166_v56 = vpop.f32.mrf.mxu0 }
  0xe6   :  { %v168_v57 = vpop.f32.mrf.mxu0 }
  0xe8   :  { %v170_v58 = vpop.f32.mrf.mxu0 }
  0xea   :  { %v1949_v59 = vpop.f32.mrf.mxu0 }
  0xec   :  { %v1951_v60 = vpop.f32.mrf.mxu0 }
  0xee   :  { %v1953_v61 = vpop.f32.mrf.mxu0 }
  0xf0   :  { %v180_v62 = vpop.f32.mrf.mxu0 }
  0xf2   :  { %v181_v63 = vpop.f32.mrf.mxu0 }
  0xf4   :  { %v256_v0 = vpop.f32.mrf.mxu0 }
  0xf5   :  { %v257_v17 = vadd.f32 %v256_v0, %v156_v52 }
  0xf6   :  { %v258_v2 = vpop.f32.mrf.mxu0 }
  0xf7   :  { %v259_v20 = vadd.f32 %v258_v2, %v158_v53 }
  0xf8   :  { %v260_v3 = vpop.f32.mrf.mxu0 }
  0xf9   :  { %v261_v24 = vadd.f32 %v260_v3, %v160_v54 }
  0xfa   :  { %v262_v4 = vpop.f32.mrf.mxu0 }
  0xfb   :  { %v263_v28 = vadd.f32 %v262_v4, %v162_v55 }
  0xfc   :  { %v266_v5 = vpop.f32.mrf.mxu0 }
  0xfd   :  { %v267_v37 = vadd.f32 %v266_v5, %v166_v56 }
  0xfe   :  { %v268_v6 = vpop.f32.mrf.mxu0 }
  0xff   :  { %v269_v38 = vadd.f32 %v268_v6, %v168_v57 }
 0x100   :  { %v270_v7 = vpop.f32.mrf.mxu0 }
 0x101   :  { %v271_v43 = vadd.f32 %v270_v7, %v170_v58 }
 0x102   :  { %v272_v8 = vpop.f32.mrf.mxu0 }
 0x103   :  { %v273_v56 = vadd.f32 %v272_v8, %v1949_v59 }
 0x104   :  { %v276_v10 = vpop.f32.mrf.mxu0 }
 0x105   :  { %v277_v57 = vadd.f32 %v276_v10, %v1951_v60 }
 0x106   :  { %v278_v11 = vpop.f32.mrf.mxu0 }
 0x107   :  { %v279_v4 = vadd.f32 %v278_v11, %v1953_v61 }
 0x108   :  { %v280_v13 = vpop.f32.mrf.mxu0 }
 0x10a   :  { %v281_v16 = vpop.f32.mrf.mxu0 }
 0x10c   :  { %v371_v19 = vpop.f32.mrf.mxu0 }
 0x10d   :  { %v398_v21 = vadd.f32 %v371_v19, %v257_v17 }
 0x10e   :  { %v373_v23 = vpop.f32.mrf.mxu0 }
 0x10f   :  { %v420_v25 = vadd.f32 %v1965_v18, %v398_v21  ;;  %v399_v26 = vadd.f32 %v373_v23, %v259_v20 }
 0x110   :  { %v375_v27 = vpop.f32.mrf.mxu0 }
 0x111   :  { %v430_v29 = vmul.f32 0.1, %v420_v25  ;;  %v421_v30 = vadd.f32 %v1969_v22, %v399_v26  ;;  %v400_v31 = vadd.f32 %v375_v27, %v261_v24 }
 0x112   :  { %v377_v32 = vpop.f32.mrf.mxu0 }
 0x113   :  { %v440_v33 = vmax.f32 %v420_v25, %v430_v29  ;;  %v431_v34 = vmul.f32 0.1, %v421_v30  ;;  %v422_v35 = vadd.f32 %v1965_v18, %v400_v31  ;;  %v401_v36 = vadd.f32 %v377_v32, %v263_v28 }
 0x114   :  { %v381_v39 = vpop.f32.mrf.mxu0 }
 0x115   :  { %v464_v40 = vrot.slane %v440_v33, 7  ;;  %v441_v41 = vmax.f32 %v421_v30, %v431_v34  ;;  %v432_v1 = vmul.f32 0.1, %v422_v35  ;;  %v423_v42 = vadd.f32 %v1969_v22, %v401_v36 }
 0x116   :  { %v402_v44 = vadd.f32 %v381_v39, %v267_v37  ;;  %v383_v45 = vpop.f32.mrf.mxu0 }
 0x117   :  { %476 = vst [vmem:[#allocation3] sm:$0xfe] %v464_v40  ;;  %v465_v46 = vrot.slane %v441_v41, 7  ;;  %v442_v47 = vmax.f32 %v422_v35, %v432_v1  ;;  %v433_v48 = vmul.f32 0.1, %v423_v42  ;;  %v403_v49 = vadd.f32 %v383_v45, %v269_v38 }
 0x118   :  { %v424_v50 = vadd.f32 %v1965_v18, %v402_v44  ;;  %v385_v51 = vpop.f32.mrf.mxu0 }
 0x119   :  { %477 = vst [vmem:[#allocation3 + $0x8] sm:$0xfe] %v465_v46  ;;  %v466_v52 = vrot.slane %v442_v47, 7  ;;  %v443_v53 = vmax.f32 %v423_v42, %v433_v48  ;;  %v425_v54 = vadd.f32 %v1969_v22, %v403_v49  ;;  %v404_v55 = vadd.f32 %v385_v51, %v271_v43 }
 0x11a   :  { %v434_v58 = vmul.f32 0.1, %v424_v50  ;;  %v387_v62 = vpop.f32.mrf.mxu0 }
 0x11b   :  { %v1980_v63 = vsel %vm463_vm3, %v464_v40, %v466_v52  ;;  %480 = vst [vmem:[#allocation3 + $0x20] sm:$0x1] %v466_v52  ;;  %v468_v0 = vrot.slane %v443_v53, 7  ;;  %v435_v2 = vmul.f32 0.1, %v425_v54  ;;  %v426_v3 = vadd.f32 %v1965_v18, %v404_v55 }
 0x11c   :  { %v444_v5 = vmax.f32 %v424_v50, %v434_v58  ;;  %v405_v6 = vadd.f32 %v387_v62, %v273_v56  ;;  %v391_v7 = vpop.f32.mrf.mxu0 }
 0x11d   :  { %v1985_v13 = vsel %vm463_vm3, %v465_v46, %v468_v0  ;;  %481 = vst [vmem:[#allocation3 + $0x28] sm:$0x1] %v468_v0  ;;  %v445_v59 = vmax.f32 %v425_v54, %v435_v2  ;;  %v436_v60 = vmul.f32 0.1, %v426_v3  ;;  %v406_v8 = vadd.f32 %v391_v7, %v277_v57 }
 0x11e   :  { %v494_v10 = vrot.slane %v444_v5, 7  ;;  %v427_v14 = vadd.f32 %v1969_v22, %v405_v6  ;;  %v393_v16 = vpop.f32.mrf.mxu0  ;;  %v516_v61 = vld [vmem:[#allocation3] sm:$0xff]  ;;  %v1755_v6 = vld [vmem:[#allocation4 + $0x264] ss:$8 sps:$4 sm:$0xff]  }
 0x11f   :  { %v495_v17 = vrot.slane %v445_v59, 7  ;;  %v446_v19 = vmax.f32 %v426_v3, %v436_v60  ;;  %v428_v20 = vadd.f32 %v1965_v18, %v406_v8  ;;  %v407_v21 = vadd.f32 %v393_v16, %v279_v4  ;;  %v564_v11 = vld [vmem:[#allocation3] sm:$0xfe] }
 0x120   :  { %510 = vst [vmem:[#allocation3 + $0x20] sm:$0xf8] %v494_v10  ;;  %v437_v23 = vmul.f32 0.1, %v427_v14  ;;  %v517_v24 = vld [vmem:[#allocation3 + $0x8] sm:$0xff]  ;;  %v395_v26 = vpop.f32.mrf.mxu0  ;;  %v526_v32 = vpack.c.bf16 %v1980_v63, %v516_v61  ;;  %v568_v33 = vpack.c.bf16 %v1980_v63, %v564_v11 }
 0x121   :  { %v565_v25 = vld [vmem:[#allocation3 + $0x8] sm:$0xfe]  ;;  %511 = vst [vmem:[#allocation3 + $0x28] sm:$0xf8] %v495_v17  ;;  %v496_v27 = vrot.slane %v446_v19, 7  ;;  %v429_v29 = vadd.f32 %v1969_v22, %v407_v21  ;;  %v527_v30 = vpack.c.bf16 %v1985_v13, %v517_v24 }
 0x122   :  { %v438_v28 = vmul.f32 0.1, %v428_v20  ;;  %v447_v31 = vmax.f32 %v427_v14, %v437_v23  ;;  %v569_v18 = vpack.c.bf16 %v1985_v13, %v565_v25  ;;  %v396_v34 = vpop.f32.mrf.mxu0  ;;  %v1100_v38 = vld [vmem:[#allocation3] sm:$0xfc]  ;;  %v609_v42 = vshll.u32 %v568_v33, 16 }
 0x123   :  { %v497_v35 = vsel %vm463_vm3, %v494_v10, %v496_v27  ;;  %v439_v37 = vmul.f32 0.1, %v429_v29  ;;  %1071 = vmatprep.mubr.bf16.mxu0 %v527_v30  ;;  %v1104_v43 = vpack.c.bf16 %v1980_v63, %v1100_v38  ;;  %v607_v58 = vshrl.u32 %v568_v33, 16  ;;  %v1750_v3 = vld [vmem:[#allocation4 + $0x270] ss:$8 sps:$4 sm:$0xff]  }
 0x124   :  { %v448_v36 = vmax.f32 %v428_v20, %v438_v28  ;;  %v498_v39 = vrot.slane %v447_v31, 7  ;;  %1072 = vmatmul.mubr.bf16.vlgmr.msra.gmra.mxu0 %v526_v32  ;;  %v621_v41 = vshll.u32 %v569_v18, 16  ;;  %v611_v52 = vrot.slane %v609_v42, 1  ;;  %v1753_v19 = vld [vmem:[#allocation4 + $0x260] ss:$8 sps:$4 sm:$0xff]  }
 0x125   :  { %v449_v22 = vmax.f32 %v429_v29, %v439_v37  ;;  %v1148_v54 = vrot.slane %v1104_v43, 1  ;;  %v619_v56 = vshrl.u32 %v569_v18, 16  ;;  %v1758_v61 = vld [vmem:[#allocation4 + $0x254] ss:$8 sps:$4 sm:$0xff]   ;;  %v1756_v29 = vld [vmem:[#allocation4 + $0x250] ss:$8 sps:$4 sm:$0xff]  }
 0x126   :  { %v500_v40 = vrot.slane %v448_v36, 7  ;;  %v499_v1 = vsel %vm463_vm3, %v495_v17, %v498_v39  ;;  %v623_v51 = vrot.slane %v621_v41, 1  ;;  %v612_v4 = vor.u32 %v611_v52, %v607_v58  ;;  %v1761_v18 = vld [vmem:[#allocation4 + $0x244] ss:$8 sps:$4 sm:$0xff]   ;;  %v1101_v34 = vld [vmem:[#allocation3 + $0x8] sm:$0xfc] }
 0x127   :  { %v502_v45 = vrot.slane %v449_v22, 7  ;;  %v520_v46 = vld [vmem:[#allocation3 + $0x20] sm:$0xff]  ;;  %v1105_v37 = vpack.c.bf16 %v1985_v13, %v1101_v34  ;;  %v1765_v43 = vld [vmem:[#allocation4 + $0x220] ss:$8 sps:$4 sm:$0xff]   ;;  %v1773_v13 = vld [vmem:[#allocation4 + $0x204] ss:$8 sps:$4 sm:$0xff]  }
 0x128   :  { %v501_v44 = vsel %vm463_vm3, %v496_v27, %v500_v40  ;;  %v521_v47 = vld [vmem:[#allocation3 + $0x28] sm:$0xff]  ;;  %v1998_v48 = vpack.c.bf16 %v497_v35, %v520_v46  ;;  %v624_v0 = vor.u32 %v623_v51, %v619_v56  ;;  %v1759_v35 = vld [vmem:[#allocation4 + $0x240] ss:$8 sps:$4 sm:$0xff]  }
 0x129   :  { %514 = vst [vmem:[#allocation3 + $0x40] sm:$0x7] %v501_v44  ;;  %v503_v49 = vsel %vm463_vm3, %v498_v39, %v502_v45  ;;  %v2001_v50 = vpack.c.bf16 %v499_v1, %v521_v47  ;;  %v1764_v36 = vld [vmem:[#allocation4 + $0x234] ss:$8 sps:$4 sm:$0xff]   ;;  %v1762_v40 = vld [vmem:[#allocation4 + $0x230] ss:$8 sps:$4 sm:$0xff]  }
 0x12a   :  { %515 = vst [vmem:[#allocation3 + $0x48] sm:$0x7] %v503_v49  ;;  %v614_v53 = vshll.u32 %v1998_v48, 16  ;;  %v1149_v55 = vrot.slane %v1998_v48, 1  ;;  %v630_v24 = vshrl.u32 %v1998_v48, 16  ;;  %v1151_v41 = vrot.slane %v1105_v37, 1 }
 0x12b   :  { %1081 = vmatprep.mubr.bf16.mxu0 %v2001_v50  ;;  %v626_v57 = vshll.u32 %v2001_v50, 16  ;;  %v638_v11 = vshrl.u32 %v2001_v50, 16  ;;  %v1152_v39 = vrot.slane %v2001_v50, 1  ;;  %v1767_v1 = vld [vmem:[#allocation4 + $0x224] ss:$8 sps:$4 sm:$0xff]  }
 0x12c   :  { %1082 = vmatmul.mubr.bf16.gmra.mxu0 %v1998_v48  ;;  %v616_v62 = vrot.slane %v614_v53, 1  ;;  %v2011_v63 = vsel %vm1147_vm4, %v1148_v54, %v1149_v55  ;;  %v1770_v44 = vld [vmem:[#allocation4 + $0x214] ss:$8 sps:$4 sm:$0xff]   ;;  %v1768_v45 = vld [vmem:[#allocation4 + $0x210] ss:$8 sps:$4 sm:$0xff]  }
 0x12d   :  { %v628_v2 = vrot.slane %v626_v57, 1  ;;  %v1153_v42 = vsel %vm1147_vm4, %v1151_v41, %v1152_v39  ;;  %v1771_v46 = vld [vmem:[#allocation4 + $0x200] ss:$8 sps:$4 sm:$0xff]   ;;  %v1776_v47 = vld [vmem:[#allocation4 + $0x2f4] ss:$8 sps:$4 sm:$0xff]  }
 0x12e   :  { %v617_v59 = vsel %vm605_vm5, %v612_v4, %v616_v62  ;;  %v632_v30 = vor.u32 %v630_v24, %v616_v62  ;;  %v1774_v49 = vld [vmem:[#allocation4 + $0x2f0] ss:$8 sps:$4 sm:$0xff]   ;;  %v1779_v50 = vld [vmem:[#allocation4 + $0x2e4] ss:$8 sps:$4 sm:$0xff]   ;;  %v1777_v51 = vld [vmem:[#allocation4 + $0x2e0] ss:$8 sps:$4 sm:$0xff]  }
 0x12f   :  { %v629_v5 = vsel %vm605_vm5, %v624_v0, %v628_v2  ;;  %v640_v26 = vor.u32 %v638_v11, %v628_v2  ;;  %v1782_v52 = vld [vmem:[#allocation4 + $0x2d4] ss:$8 sps:$4 sm:$0xff]   ;;  %v1780_v53 = vld [vmem:[#allocation4 + $0x2d0] ss:$8 sps:$4 sm:$0xff]   ;;  %v1785_v54 = vld [vmem:[#allocation4 + $0x2c4] ss:$8 sps:$4 sm:$0xff]  }
 0x130   :  { %v566_v7 = vld [vmem:[#allocation3 + $0x40] sm:$0x7]  ;;  %850 = vmatprep.mubr.bf16.mxu1 %v629_v5  ;;  %v1783_v56 = vld [vmem:[#allocation4 + $0x2c0] ss:$8 sps:$4 sm:$0xff]   ;;  %v1788_v57 = vld [vmem:[#allocation4 + $0x2b4] ss:$8 sps:$4 sm:$0xff]  }
 0x131   :  { %v524_v60 = vld [vmem:[#allocation3 + $0x40] sm:$0x3]  ;;  %v570_v8 = vpack.c.bf16 %v566_v7, %v566_v7  ;;  %v525_v10 = vld [vmem:[#allocation3 + $0x48] sm:$0x3]  ;;  %851 = vmatmul.mubr.bf16.vlgmr.msra.gmra.mxu1 %v617_v59  ;;  %v1791_v62 = vld [vmem:[#allocation4 + $0x2a4] ss:$8 sps:$4 sm:$0xff]  }
 0x132   :  { %v567_v14 = vld [vmem:[#allocation3 + $0x48] sm:$0x7]  ;;  %v531_v16 = vpack.c.bf16 %v525_v10, %v525_v10  ;;  %1325 = vmatpush1.bf16.msra.mxu1 %v1750_v3  ;;  %v530_v21 = vpack.c.bf16 %v524_v60, %v524_v60  ;;  %v1789_v0 = vld [vmem:[#allocation4 + $0x2a0] ss:$8 sps:$4 sm:$0xff]   ;;  %v1794_v2 = vld [vmem:[#allocation4 + $0x294] ss:$8 sps:$4 sm:$0xff]  }
 0x133   :  { %v571_v17 = vpack.c.bf16 %v567_v14, %v567_v14  ;;  %v634_v20 = vshll.u32 %v570_v8, 16  ;;  %1326 = vmatprep.subr.bf16.mxu1 %v1755_v6  ;;  %v646_v38 = vshrl.u32 %v570_v8, 16  ;;  %v1786_v58 = vld [vmem:[#allocation4 + $0x2b0] ss:$8 sps:$4 sm:$0xff]   ;;  %v1797_v5 = vld [vmem:[#allocation4 + $0x284] ss:$8 sps:$4 sm:$0xff]  }
 0x134   :  { %1091 = vmatprep.mubr.bf16.mxu0 %v531_v16  ;;  %v1792_v3 = vld [vmem:[#allocation4 + $0x290] ss:$8 sps:$4 sm:$0xff]   ;;  %v1795_v7 = vld [vmem:[#allocation4 + $0x280] ss:$8 sps:$4 sm:$0xff]  }
 0x135   :  { %v642_v23 = vshll.u32 %v571_v17, 16  ;;  %1092 = vmatmul.mubr.bf16.gmra.mxu0 %v530_v21  ;;  %v636_v25 = vrot.slane %v634_v20, 1  ;;  %v649_v28 = vshrl.u32 %v571_v17, 16  ;;  %v1103_v4 = vld [vmem:[#allocation3 + $0x48] sm:$0xf] }
 0x136   :  { %1327 = vmatpush1.bf16.msra.mxu1 %v1753_v19  ;;  %v1107_v6 = vpack.c.bf16 %v1103_v4, %v1103_v4  ;;  %v1102_v60 = vld [vmem:[#allocation3 + $0x40] sm:$0xf] }
 0x137   :  { %v644_v27 = vrot.slane %v642_v23, 1  ;;  %1328 = vmatprep.subr.bf16.mxu1 %v1758_v61  ;;  %v637_v33 = vsel %vm605_vm5, %v632_v30, %v636_v25  ;;  %v648_v22 = vor.u32 %v646_v38, %v636_v25  ;;  %v1106_v8 = vpack.c.bf16 %v1102_v60, %v1102_v60 }
 0x138   :  { %v1156_v59 = vrot.slane %v1107_v6, 1 }
 0x139   :  { %v645_v31 = vsel %vm605_vm5, %v640_v26, %v644_v27  ;;  %v651_v32 = vor.u32 %v649_v28, %v644_v27  ;;  %v1154_v14 = vrot.slane %v1106_v8, 1 }
 0x13a   :  { %860 = vmatprep.mubr.bf16.mxu1 %v645_v31  ;;  %1329 = vmatpush1.bf16.msra.mxu1 %v1756_v29  ;;  %v1157_v10 = vsel %vm1147_vm4, %v1152_v39, %v1156_v59  ;;  %v1395_v39 = vld [vmem:[%s2066_s4] sm:$0x3] }
 0x13b   :  { %861 = vmatmul.mubr.bf16.gmra.mxu1 %v637_v33  ;;  %1330 = vmatprep.subr.bf16.mxu1 %v1761_v18  ;;  %v1155_v16 = vsel %vm1147_vm4, %v1149_v55, %v1154_v14 }
 0x13c   :  { %870 = vmatprep.mubr.bf16.mxu1 %v651_v32 }
 0x13e   :  { %1331 = vmatpush1.bf16.msra.mxu1 %v1759_v35 }
 0x13f   :  { %1332 = vmatprep.subr.bf16.mxu1 %v1764_v36 }
 0x142   :  { %1333 = vmatpush1.bf16.msra.mxu1 %v1762_v40 }
 0x143   :  { %871 = vmatmul.mubr.bf16.gmra.mxu1 %v648_v22  ;;  %1334 = vmatprep.subr.bf16.mxu1 %v1767_v1  ;;  %v1400_v22 = vrot.slane %v1395_v39, %v412_v12 }
 0x144   :  { %1356 = vmatprep.mubr.bf16.mxu1 %v1153_v42 }
 0x146   :  { %1335 = vmatpush1.bf16.msra.mxu1 %v1765_v43  ;;  %v1404_v43 = vrot.slane %v1395_v39, %v416_v15 }
 0x147   :  { %1336 = vmatprep.subr.bf16.mxu1 %v1770_v44 }
 0x14a   :  { %1337 = vmatpush1.bf16.msra.mxu1 %v1768_v45 }
 0x14b   :  { %1338 = vmatprep.subr.bf16.mxu1 %v1773_v13 }
 0x14e   :  { %1339 = vmatpush1.bf16.msra.mxu1 %v1771_v46 }
 0x14f   :  { %1340 = vmatprep.subr.bf16.mxu1 %v1776_v47 }
 0x152   :  { %1341 = vmatpush2.bf16.msra.mxu1 %v1774_v49 }
 0x153   :  { %1342 = vmatprep.subr.bf16.mxu1 %v1779_v50 }
 0x156   :  { %1343 = vmatpush2.bf16.msra.mxu1 %v1777_v51 }
 0x157   :  { %1344 = vmatprep.subr.bf16.mxu1 %v1782_v52 }
 0x15a   :  { %1345 = vmatpush2.bf16.msra.mxu1 %v1780_v53 }
 0x15b   :  { %1346 = vmatprep.subr.bf16.mxu1 %v1785_v54 }
 0x15e   :  { %1347 = vmatpush2.bf16.msra.mxu1 %v1783_v56 }
 0x15f   :  { %1348 = vmatprep.subr.bf16.mxu1 %v1788_v57 }
 0x162   :  { %1349 = vmatpush2.bf16.msra.mxu1 %v1786_v58 }
 0x163   :  { %1350 = vmatprep.subr.bf16.mxu1 %v1791_v62 }
 0x166   :  { %1351 = vmatpush2.bf16.msra.mxu1 %v1789_v0 }
 0x167   :  { %1352 = vmatprep.subr.bf16.mxu1 %v1794_v2 }
 0x16a   :  { %1353 = vmatpush2.bf16.msra.mxu1 %v1792_v3 }
 0x16b   :  { %1354 = vmatprep.subr.bf16.mxu1 %v1797_v5 }
 0x16e   :  { %1355 = vmatpush2.bf16.msra.mxu1 %v1795_v7 }
 0x171   :  { %1357 = vmatmul.mubr.bf16.vlgmr.msra.gmra.mxu1 %v2011_v63 }
 0x172   :  { %1366 = vmatprep.mubr.bf16.mxu1 %v1157_v10 }
 0x179   :  { %1367 = vmatmul.mubr.bf16.gmra.mxu1 %v1155_v16 }
 0x17a   :  { %1376 = vmatprep.mubr.bf16.mxu1 %v1156_v59 }
 0x181   :  { %1377 = vmatmul.mubr.bf16.gmra.mxu1 %v1154_v14 }
 0x1e4   :  { %v1073_v17 = vpop.f32.mrf.mxu0 }
 0x1e6   :  { %v1075_v19 = vpop.f32.mrf.mxu0 }
 0x1e8   :  { %v1077_v20 = vpop.f32.mrf.mxu0 }
 0x1ea   :  { %v1079_v21 = vpop.f32.mrf.mxu0 }
 0x1ec   :  { %v1083_v61 = vpop.f32.mrf.mxu0 }
 0x1ee   :  { %v1085_v11 = vpop.f32.mrf.mxu0 }
 0x1f0   :  { %v1087_v23 = vpop.f32.mrf.mxu0 }
 0x1f1   :  { %v852_v24 = vpop.f32.mrf.mxu1 }
 0x1f2   :  { %v1089_v63 = vpop.f32.mrf.mxu0  ;;  %v1074_v40 = vadd.f32 %v1073_v17, %v852_v24 }
 0x1f3   :  { %v854_v25 = vpop.f32.mrf.mxu1 }
 0x1f4   :  { %v1076_v1 = vadd.f32 %v1075_v19, %v854_v25 }
 0x1f5   :  { %v1093_v26 = vpop.f32.mrf.mxu0  ;;  %v856_v27 = vpop.f32.mrf.mxu1 }
 0x1f6   :  { %v1078_v45 = vadd.f32 %v1077_v20, %v856_v27 }
 0x1f7   :  { %v1095_v28 = vpop.f32.mrf.mxu0  ;;  %v858_v29 = vpop.f32.mrf.mxu1 }
 0x1f8   :  { %v1080_v49 = vadd.f32 %v1079_v21, %v858_v29 }
 0x1f9   :  { %v1097_v48 = vpop.f32.mrf.mxu0 }
 0x1fb   :  { %v862_v30 = vpop.f32.mrf.mxu1  ;;  %v1098_v31 = vpop.f32.mrf.mxu0 }
 0x1fc   :  { %v1084_v55 = vadd.f32 %v1083_v61, %v862_v30 }
 0x1fd   :  { %v864_v32 = vpop.f32.mrf.mxu1 }
 0x1fe   :  { %v1086_v18 = vadd.f32 %v1085_v11, %v864_v32 }
 0x1ff   :  { %v866_v33 = vpop.f32.mrf.mxu1 }
 0x200   :  { %v1088_v2 = vadd.f32 %v1087_v23, %v866_v33 }
 0x201   :  { %v868_v34 = vpop.f32.mrf.mxu1 }
 0x202   :  { %v1090_v59 = vadd.f32 %v1089_v63, %v868_v34 }
 0x203   :  { %v872_v35 = vpop.f32.mrf.mxu1 }
 0x204   :  { %v1094_v61 = vadd.f32 %v1093_v26, %v872_v35 }
 0x205   :  { %v874_v36 = vpop.f32.mrf.mxu1 }
 0x206   :  { %v1096_v23 = vadd.f32 %v1095_v28, %v874_v36 }
 0x207   :  { %v876_v37 = vpop.f32.mrf.mxu1 }
 0x209   :  { %v877_v38 = vpop.f32.mrf.mxu1 }
 0x231   :  { %v1358_v41 = vpop.f32.mrf.mxu1 }
 0x232   :  { %v1385_v42 = vadd.f32 %v1358_v41, %v1074_v40 }
 0x233   :  { %v1360_v44 = vpop.f32.mrf.mxu1 }
 0x234   :  { %v1407_v13 = vadd.f32 %v1400_v22, %v1385_v42  ;;  %v1386_v46 = vadd.f32 %v1360_v44, %v1076_v1 }
 0x235   :  { %v1362_v47 = vpop.f32.mrf.mxu1 }
 0x236   :  { %v1417_v50 = vmul.f32 0.1, %v1407_v13  ;;  %v1408_v51 = vadd.f32 %v1404_v43, %v1386_v46  ;;  %v1387_v52 = vadd.f32 %v1362_v47, %v1078_v45 }
 0x237   :  { %v1364_v53 = vpop.f32.mrf.mxu1 }
 0x238   :  { %v1427_v54 = vmax.f32 %v1407_v13, %v1417_v50  ;;  %v1418_v56 = vmul.f32 0.1, %v1408_v51  ;;  %v1409_v57 = vadd.f32 %v1400_v22, %v1387_v52  ;;  %v1388_v12 = vadd.f32 %v1364_v53, %v1080_v49 }
 0x239   :  { %v1368_v58 = vpop.f32.mrf.mxu1 }
 0x23a   :  { %1437 = vst [vmem:[%s2067_s5] sm:$0xff] %v1427_v54  ;;  %v1428_v9 = vmax.f32 %v1408_v51, %v1418_v56  ;;  %v1419_v15 = vmul.f32 0.1, %v1409_v57  ;;  %v1410_v62 = vadd.f32 %v1404_v43, %v1388_v12  ;;  %v1389_v0 = vadd.f32 %v1368_v58, %v1084_v55 }
 0x23b   :  { %v1370_v3 = vpop.f32.mrf.mxu1 }
 0x23c   :  { %1438 = vst [vmem:[%s2067_s5 + $0x8] sm:$0xff] %v1428_v9  ;;  %v1429_v4 = vmax.f32 %v1409_v57, %v1419_v15  ;;  %v1420_v5 = vmul.f32 0.1, %v1410_v62  ;;  %v1411_v6 = vadd.f32 %v1400_v22, %v1389_v0  ;;  %v1390_v7 = vadd.f32 %v1370_v3, %v1086_v18 }
 0x23d   :  { %v1372_v60 = vpop.f32.mrf.mxu1 }
 0x23e   :  { %1439 = vst [vmem:[%s2067_s5 + $0x10] sm:$0xff] %v1429_v4  ;;  %v1430_v8 = vmax.f32 %v1410_v62, %v1420_v5  ;;  %v1421_v10 = vmul.f32 0.1, %v1411_v6  ;;  %v1412_v14 = vadd.f32 %v1404_v43, %v1390_v7  ;;  %v1391_v16 = vadd.f32 %v1372_v60, %v1088_v2 }
 0x23f   :  { %v1374_v17 = vpop.f32.mrf.mxu1 }
 0x240   :  { %1440 = vst [vmem:[%s2067_s5 + $0x18] sm:$0xff] %v1430_v8  ;;  %v1422_v19 = vmul.f32 0.1, %v1412_v14  ;;  %v1413_v20 = vadd.f32 %v1400_v22, %v1391_v16  ;;  %v1392_v21 = vadd.f32 %v1374_v17, %v1090_v59  ;;  %v1431_v24 = vmax.f32 %v1411_v6, %v1421_v10 }
 0x241   :  { %v1378_v11 = vpop.f32.mrf.mxu1 }
 0x242   :  { %v1423_v63 = vmul.f32 0.1, %v1413_v20  ;;  %v1414_v25 = vadd.f32 %v1404_v43, %v1392_v21  ;;  %v1393_v27 = vadd.f32 %v1378_v11, %v1094_v61  ;;  %v1432_v48 = vmax.f32 %v1412_v14, %v1422_v19 }
 0x243   :  { %v1380_v29 = vpop.f32.mrf.mxu1  ;;  %v1448_v33 = vrot.slane %v1431_v24, 2 }
 0x244   :  { %v1433_v30 = vmax.f32 %v1413_v20, %v1423_v63  ;;  %v1424_v55 = vmul.f32 0.1, %v1414_v25  ;;  %v1394_v31 = vadd.f32 %v1380_v29, %v1096_v23  ;;  %v1415_v32 = vadd.f32 %v1400_v22, %v1393_v27 }
 0x245   :  { %v1382_v18 = vpop.f32.mrf.mxu1  ;;  %v1451_v35 = vrot.slane %v1432_v48, 2 }
 0x246   :  { %v1449_v34 = vrot.slane %v1433_v30, 2  ;;  %v1434_v37 = vmax.f32 %v1414_v25, %v1424_v55  ;;  %v1416_v38 = vadd.f32 %v1404_v43, %v1394_v31  ;;  %v1425_v39 = vmul.f32 0.1, %v1415_v32 }
 0x247   :  { %v1383_v26 = vpop.f32.mrf.mxu1 }
 0x248   :  { %v1450_v28 = vsel %vm1447_vm6, %v1448_v33, %v1449_v34  ;;  %v1452_v36 = vrot.slane %v1434_v37, 2  ;;  %v1426_v40 = vmul.f32 0.1, %v1416_v38  ;;  %v1435_v41 = vmax.f32 %v1415_v32, %v1425_v39 }
 0x249   :  { %1609 = vst [vmem:[%s2067_s5 + $0x20] sm:$0xff] %v1450_v28 }
 0x24a   :  { %v1453_v1 = vsel %vm1447_vm6, %v1451_v35, %v1452_v36  ;;  %v1436_v22 = vmax.f32 %v1416_v38, %v1426_v40  ;;  %v1454_v42 = vrot.slane %v1435_v41, 2 }
 0x24b   :  { %1610 = vst [vmem:[%s2067_s5 + $0x28] sm:$0xff] %v1453_v1 }
 0x24c   :  { %v1456_v43 = vrot.slane %v1436_v22, 2  ;;  %v1455_v44 = vsel %vm1447_vm6, %v1449_v34, %v1454_v42 }
 0x24d   :  { %1611 = vst [vmem:[%s2067_s5 + $0x30] sm:$0xff] %v1455_v44 }
 0x24e   :  { %v1457_v45 = vsel %vm1447_vm6, %v1452_v36, %v1456_v43 }
 0x24f   :  { %1612 = vst [vmem:[%s2067_s5 + $0x38] sm:$0xff] %v1457_v45 }
 0x250   :  { %1471 = vsyncpa [#allocation5], 1 }

</bundles_post_ra>
